<compile_context>
chip_gen: v7x
topology: tpu7x:2x2x1
jax: 0.10.0
libtpu: 0.0.40
codegen_flags: <defaults>
</compile_context>

<pallas_src>
import jax
import jax.numpy as jnp
from jax.experimental import pallas as pl
from jax.experimental.pallas import tpu as pltpu


def rnn_kernel(x_ref, w_ih_ref, w_hh_ref, b_ref, w_fc_ref, b_fc_ref, out_ref):
    """Elman RNN (tanh) over the full sequence + final Linear, all in VMEM/vregs.

    x_ref:   (B, T)   input, trailing size-1 feature dim already dropped
    w_ih_ref:(1, H)   input->hidden weights as a row (W_ih^T, since I == 1)
    w_hh_ref:(H, H)   hidden->hidden weights (transposed vs PyTorch)
    b_ref:   (1, H)   b_ih + b_hh (folded)
    w_fc_ref:(H, O)   fc weights (transposed vs PyTorch)
    b_fc_ref:(1, O)   fc bias
    out_ref: (B, O)   output (fc applied to last hidden state)
    """
    B, T = x_ref.shape
    H = w_hh_ref.shape[0]

    # Single loads of everything (nothing re-loads / re-broadcasts per step).
    x = x_ref[...]          # (B, T)
    w_row = w_ih_ref[...]   # (1, H)
    w_hh = w_hh_ref[...]    # (H, H)
    bias = b_ref[...]       # (1, H)
    w_fc = w_fc_ref[...]    # (H, O)
    b_fc = b_fc_ref[...]    # (1, O)

    # Hoisted input projection for every timestep:
    #   xw[t] = x[:, t] * W_ih^T + (b_ih + b_hh)   -> (B, H)
    # With I == 1 this is a rank-1 broadcast (VPU only), fully independent of
    # the recurrence, so the scheduler overlaps it with the serial chain.
    xw = [x[:, t:t + 1] * w_row + bias for t in range(T)]

    # Recurrence, fully unrolled (T is static) -- equivalent to
    # lax.fori_loop(..., unroll=True) but keeps h strictly in vregs with no
    # VMEM scratch round-trip.  h_0 = 0 (PyTorch default).
    h = jnp.zeros((B, H), jnp.float32)
    for t in range(T):
        h = jnp.tanh(
            xw[t] + jnp.dot(h, w_hh, preferred_element_type=jnp.float32))

    # fc(out[:, -1, :])
    out_ref[...] = (
        jnp.dot(h, w_fc, preferred_element_type=jnp.float32) + b_fc)


@jax.jit
def simple_rnn_forward(x, w_ih, w_hh, b_ih, b_hh, w_fc, b_fc):
    """x: (B, T, 1) batch-first, like the PyTorch module. Returns (B, O)."""
    B, T, I = x.shape
    H = w_hh.shape[0]
    O = w_fc.shape[0]
    if I != 1:
        raise NotImplementedError(
            "kernel is specialized to input_size == 1 (the module spec)")

    # Glue is layout plumbing only (reshapes / transposes of tiny weights).
    x2 = x.reshape(B, T).astype(jnp.float32)              # free (drops unit dim)
    w_row = w_ih.reshape(1, H).astype(jnp.float32)        # (H,1) -> (1,H) row
    w_hh_t = jnp.transpose(w_hh).astype(jnp.float32)      # (H, H)
    b = (b_ih + b_hh).reshape(1, H).astype(jnp.float32)   # (1, H)
    w_fc_t = jnp.transpose(w_fc).astype(jnp.float32)      # (H, O)
    b_fc_r = b_fc.reshape(1, O).astype(jnp.float32)       # (1, O)

    vmem = pl.BlockSpec(memory_space=pltpu.MemorySpace.VMEM)
    return pl.pallas_call(
        rnn_kernel,
        out_shape=jax.ShapeDtypeStruct((B, O), jnp.float32),
        in_specs=[vmem] * 6,
        out_specs=vmem,
    )(x2, w_row, w_hh_t, b, w_fc_t, b_fc_r)


def reference_forward(x, w_ih, w_hh, b_ih, b_hh, w_fc, b_fc):
    """Pure-JAX reference matching torch.nn.RNN(batch_first=True) + Linear."""
    B, T, I = x.shape
    H = w_hh.shape[0]
    h = jnp.zeros((B, H), jnp.float32)
    for t in range(T):
        h = jnp.tanh(x[:, t, :] @ w_ih.T + b_ih + h @ w_hh.T + b_hh)
    return h @ w_fc.T + b_fc


if __name__ == "__main__":
    hidden_size = 10
    input_size = 1
    output_size = 1
    batch = 2
    seq = 8

    key = jax.random.PRNGKey(0)
    kx, k1, k2, k3, k4, k5, k6 = jax.random.split(key, 7)

    # Deterministic parameter init (PyTorch-style uniform(-1/sqrt(H), 1/sqrt(H))).
    bound = 1.0 / jnp.sqrt(jnp.float32(hidden_size))
    w_ih = jax.random.uniform(k1, (hidden_size, input_size), jnp.float32, -bound, bound)
    w_hh = jax.random.uniform(k2, (hidden_size, hidden_size), jnp.float32, -bound, bound)
    b_ih = jax.random.uniform(k3, (hidden_size,), jnp.float32, -bound, bound)
    b_hh = jax.random.uniform(k4, (hidden_size,), jnp.float32, -bound, bound)
    w_fc = jax.random.uniform(k5, (output_size, hidden_size), jnp.float32, -bound, bound)
    b_fc = jax.random.uniform(k6, (output_size,), jnp.float32, -bound, bound)

    x = jax.random.normal(kx, (batch, seq, input_size), jnp.float32)

    out = simple_rnn_forward(x, w_ih, w_hh, b_ih, b_hh, w_fc, b_fc)
    out = jax.block_until_ready(out)

    ref = reference_forward(x, w_ih, w_hh, b_ih, b_hh, w_fc, b_fc)
    assert out.shape == (batch, output_size)
    assert jnp.allclose(out, ref, atol=1e-5, rtol=1e-5), (out, ref)

    print("KERNEL_OK")
</pallas_src>

<mosaic_0001>
module attributes {stable_mosaic.version = 11 : i64} {
  func.func @rnn_kernel(%arg0: memref<2x8xf32, #tpu.memory_space<vmem>>, %arg1: memref<1x10xf32, #tpu.memory_space<vmem>>, %arg2: memref<10x10xf32, #tpu.memory_space<vmem>>, %arg3: memref<1x10xf32, #tpu.memory_space<vmem>>, %arg4: memref<10x1xf32, #tpu.memory_space<vmem>>, %arg5: memref<1x1xf32, #tpu.memory_space<vmem>>, %arg6: memref<2x1xf32, #tpu.memory_space<vmem>>) attributes {dimension_semantics = [], scalar_prefetch = 0 : i64, scratch_operands = 0 : i64, tpu.core_type = #tpu.core_type<tc>} {
    %c0 = arith.constant 0 : index
    %c0_0 = arith.constant 0 : index
    %0 = vector.load %arg0[%c0, %c0_0] : memref<2x8xf32, #tpu.memory_space<vmem>>, vector<2x8xf32>
    %c0_1 = arith.constant 0 : index
    %c0_2 = arith.constant 0 : index
    %1 = vector.load %arg1[%c0_1, %c0_2] : memref<1x10xf32, #tpu.memory_space<vmem>>, vector<1x10xf32>
    %c0_3 = arith.constant 0 : index
    %c0_4 = arith.constant 0 : index
    %2 = vector.load %arg2[%c0_3, %c0_4] : memref<10x10xf32, #tpu.memory_space<vmem>>, vector<10x10xf32>
    %c0_5 = arith.constant 0 : index
    %c0_6 = arith.constant 0 : index
    %3 = vector.load %arg3[%c0_5, %c0_6] : memref<1x10xf32, #tpu.memory_space<vmem>>, vector<1x10xf32>
    %c0_7 = arith.constant 0 : index
    %c0_8 = arith.constant 0 : index
    %4 = vector.load %arg4[%c0_7, %c0_8] : memref<10x1xf32, #tpu.memory_space<vmem>>, vector<10x1xf32>
    %c0_9 = arith.constant 0 : index
    %c0_10 = arith.constant 0 : index
    %5 = vector.load %arg5[%c0_9, %c0_10] : memref<1x1xf32, #tpu.memory_space<vmem>>, vector<1x1xf32>
    %6 = vector.extract_strided_slice %0 {offsets = [0, 0], sizes = [2, 1], strides = [1, 1]} : vector<2x8xf32> to vector<2x1xf32>
    %7 = vector.broadcast %6 : vector<2x1xf32> to vector<2x10xf32>
    %8 = vector.broadcast %1 : vector<1x10xf32> to vector<2x10xf32>
    %9 = arith.mulf %7, %8 : vector<2x10xf32>
    %10 = vector.broadcast %3 : vector<1x10xf32> to vector<2x10xf32>
    %11 = arith.addf %9, %10 : vector<2x10xf32>
    %12 = vector.extract_strided_slice %0 {offsets = [0, 1], sizes = [2, 1], strides = [1, 1]} : vector<2x8xf32> to vector<2x1xf32>
    %13 = vector.broadcast %12 : vector<2x1xf32> to vector<2x10xf32>
    %14 = vector.broadcast %1 : vector<1x10xf32> to vector<2x10xf32>
    %15 = arith.mulf %13, %14 : vector<2x10xf32>
    %16 = vector.broadcast %3 : vector<1x10xf32> to vector<2x10xf32>
    %17 = arith.addf %15, %16 : vector<2x10xf32>
    %18 = vector.extract_strided_slice %0 {offsets = [0, 2], sizes = [2, 1], strides = [1, 1]} : vector<2x8xf32> to vector<2x1xf32>
    %19 = vector.broadcast %18 : vector<2x1xf32> to vector<2x10xf32>
    %20 = vector.broadcast %1 : vector<1x10xf32> to vector<2x10xf32>
    %21 = arith.mulf %19, %20 : vector<2x10xf32>
    %22 = vector.broadcast %3 : vector<1x10xf32> to vector<2x10xf32>
    %23 = arith.addf %21, %22 : vector<2x10xf32>
    %24 = vector.extract_strided_slice %0 {offsets = [0, 3], sizes = [2, 1], strides = [1, 1]} : vector<2x8xf32> to vector<2x1xf32>
    %25 = vector.broadcast %24 : vector<2x1xf32> to vector<2x10xf32>
    %26 = vector.broadcast %1 : vector<1x10xf32> to vector<2x10xf32>
    %27 = arith.mulf %25, %26 : vector<2x10xf32>
    %28 = vector.broadcast %3 : vector<1x10xf32> to vector<2x10xf32>
    %29 = arith.addf %27, %28 : vector<2x10xf32>
    %30 = vector.extract_strided_slice %0 {offsets = [0, 4], sizes = [2, 1], strides = [1, 1]} : vector<2x8xf32> to vector<2x1xf32>
    %31 = vector.broadcast %30 : vector<2x1xf32> to vector<2x10xf32>
    %32 = vector.broadcast %1 : vector<1x10xf32> to vector<2x10xf32>
    %33 = arith.mulf %31, %32 : vector<2x10xf32>
    %34 = vector.broadcast %3 : vector<1x10xf32> to vector<2x10xf32>
    %35 = arith.addf %33, %34 : vector<2x10xf32>
    %36 = vector.extract_strided_slice %0 {offsets = [0, 5], sizes = [2, 1], strides = [1, 1]} : vector<2x8xf32> to vector<2x1xf32>
    %37 = vector.broadcast %36 : vector<2x1xf32> to vector<2x10xf32>
    %38 = vector.broadcast %1 : vector<1x10xf32> to vector<2x10xf32>
    %39 = arith.mulf %37, %38 : vector<2x10xf32>
    %40 = vector.broadcast %3 : vector<1x10xf32> to vector<2x10xf32>
    %41 = arith.addf %39, %40 : vector<2x10xf32>
    %42 = vector.extract_strided_slice %0 {offsets = [0, 6], sizes = [2, 1], strides = [1, 1]} : vector<2x8xf32> to vector<2x1xf32>
    %43 = vector.broadcast %42 : vector<2x1xf32> to vector<2x10xf32>
    %44 = vector.broadcast %1 : vector<1x10xf32> to vector<2x10xf32>
    %45 = arith.mulf %43, %44 : vector<2x10xf32>
    %46 = vector.broadcast %3 : vector<1x10xf32> to vector<2x10xf32>
    %47 = arith.addf %45, %46 : vector<2x10xf32>
    %48 = vector.extract_strided_slice %0 {offsets = [0, 7], sizes = [2, 1], strides = [1, 1]} : vector<2x8xf32> to vector<2x1xf32>
    %49 = vector.broadcast %48 : vector<2x1xf32> to vector<2x10xf32>
    %50 = vector.broadcast %1 : vector<1x10xf32> to vector<2x10xf32>
    %51 = arith.mulf %49, %50 : vector<2x10xf32>
    %52 = vector.broadcast %3 : vector<1x10xf32> to vector<2x10xf32>
    %53 = arith.addf %51, %52 : vector<2x10xf32>
    %cst = arith.constant 0.000000e+00 : f32
    %54 = vector.broadcast %cst : f32 to vector<2x10xf32>
    %cst_11 = arith.constant dense<0.000000e+00> : vector<2x10xf32>
    %55 = tpu.matmul %54, %2, %cst_11 {dimension_numbers = #tpu.dot_dimension_numbers<[1], [0], [0], [1], [0, 0, 1, 1], [], []>} : vector<2x10xf32>, vector<10x10xf32>, vector<2x10xf32> -> vector<2x10xf32>
    %56 = arith.addf %11, %55 : vector<2x10xf32>
    %57 = math.tanh %56 : vector<2x10xf32>
    %cst_12 = arith.constant dense<0.000000e+00> : vector<2x10xf32>
    %58 = tpu.matmul %57, %2, %cst_12 {dimension_numbers = #tpu.dot_dimension_numbers<[1], [0], [0], [1], [0, 0, 1, 1], [], []>} : vector<2x10xf32>, vector<10x10xf32>, vector<2x10xf32> -> vector<2x10xf32>
    %59 = arith.addf %17, %58 : vector<2x10xf32>
    %60 = math.tanh %59 : vector<2x10xf32>
    %cst_13 = arith.constant dense<0.000000e+00> : vector<2x10xf32>
    %61 = tpu.matmul %60, %2, %cst_13 {dimension_numbers = #tpu.dot_dimension_numbers<[1], [0], [0], [1], [0, 0, 1, 1], [], []>} : vector<2x10xf32>, vector<10x10xf32>, vector<2x10xf32> -> vector<2x10xf32>
    %62 = arith.addf %23, %61 : vector<2x10xf32>
    %63 = math.tanh %62 : vector<2x10xf32>
    %cst_14 = arith.constant dense<0.000000e+00> : vector<2x10xf32>
    %64 = tpu.matmul %63, %2, %cst_14 {dimension_numbers = #tpu.dot_dimension_numbers<[1], [0], [0], [1], [0, 0, 1, 1], [], []>} : vector<2x10xf32>, vector<10x10xf32>, vector<2x10xf32> -> vector<2x10xf32>
    %65 = arith.addf %29, %64 : vector<2x10xf32>
    %66 = math.tanh %65 : vector<2x10xf32>
    %cst_15 = arith.constant dense<0.000000e+00> : vector<2x10xf32>
    %67 = tpu.matmul %66, %2, %cst_15 {dimension_numbers = #tpu.dot_dimension_numbers<[1], [0], [0], [1], [0, 0, 1, 1], [], []>} : vector<2x10xf32>, vector<10x10xf32>, vector<2x10xf32> -> vector<2x10xf32>
    %68 = arith.addf %35, %67 : vector<2x10xf32>
    %69 = math.tanh %68 : vector<2x10xf32>
    %cst_16 = arith.constant dense<0.000000e+00> : vector<2x10xf32>
    %70 = tpu.matmul %69, %2, %cst_16 {dimension_numbers = #tpu.dot_dimension_numbers<[1], [0], [0], [1], [0, 0, 1, 1], [], []>} : vector<2x10xf32>, vector<10x10xf32>, vector<2x10xf32> -> vector<2x10xf32>
    %71 = arith.addf %41, %70 : vector<2x10xf32>
    %72 = math.tanh %71 : vector<2x10xf32>
    %cst_17 = arith.constant dense<0.000000e+00> : vector<2x10xf32>
    %73 = tpu.matmul %72, %2, %cst_17 {dimension_numbers = #tpu.dot_dimension_numbers<[1], [0], [0], [1], [0, 0, 1, 1], [], []>} : vector<2x10xf32>, vector<10x10xf32>, vector<2x10xf32> -> vector<2x10xf32>
    %74 = arith.addf %47, %73 : vector<2x10xf32>
    %75 = math.tanh %74 : vector<2x10xf32>
    %cst_18 = arith.constant dense<0.000000e+00> : vector<2x10xf32>
    %76 = tpu.matmul %75, %2, %cst_18 {dimension_numbers = #tpu.dot_dimension_numbers<[1], [0], [0], [1], [0, 0, 1, 1], [], []>} : vector<2x10xf32>, vector<10x10xf32>, vector<2x10xf32> -> vector<2x10xf32>
    %77 = arith.addf %53, %76 : vector<2x10xf32>
    %78 = math.tanh %77 : vector<2x10xf32>
    %cst_19 = arith.constant dense<0.000000e+00> : vector<2x1xf32>
    %79 = tpu.matmul %78, %4, %cst_19 {dimension_numbers = #tpu.dot_dimension_numbers<[1], [0], [0], [1], [0, 0, 1, 1], [], []>} : vector<2x10xf32>, vector<10x1xf32>, vector<2x1xf32> -> vector<2x1xf32>
    %80 = vector.broadcast %5 : vector<1x1xf32> to vector<2x1xf32>
    %81 = arith.addf %79, %80 : vector<2x1xf32>
    %c0_20 = arith.constant 0 : index
    %c0_21 = arith.constant 0 : index
    %82 = vector.load %arg6[%c0_20, %c0_21] : memref<2x1xf32, #tpu.memory_space<vmem>>, vector<2x1xf32>
    tpu.vector_store %arg6[%c0_20, %c0_21], %81 {strides = array<i32>} : memref<2x1xf32, #tpu.memory_space<vmem>>, vector<2x1xf32>,
    return
  }
}

</mosaic_0001>

<bundles_post_ra>
// kernel: simple_rnn_forward.1
= control target key start
LH: loop header
LB: loop body
LE: loop exit
PB: predicated region body
PF: predicated region fallthrough
CT: control target
= control target key end

     0   :  { %vm98_vm0 = vcmask 1041408   ;;  %v970_v0 = vmov 0.0|0.0   ;;  %vm971_vm1 = vmmov 1   ;;  %vm972_vm3 = vmmov 0   ;;  %s1142_s2 = inlined_call_operand.vmem [shape: f32[10,10], index: 2, kind: input, shape index: {}]   ;;  %s1143_s0 = inlined_call_operand.vmem [shape: f32[2,8], index: 0, kind: input, shape index: {}]   ;;  %s1144_s1 = inlined_call_operand.vmem [shape: f32[1,10], index: 1, kind: input, shape index: {}]   ;;  %s1145_s3 = inlined_call_operand.vmem [shape: f32[1,10], index: 3, kind: input, shape index: {}]   ;;  %s1146_s4 = inlined_call_operand.vmem [shape: f32[10,1], index: 4, kind: input, shape index: {}]   ;;  %s1147_s5 = inlined_call_operand.<no memory space> [shape: f32[1,1], index: 5, kind: input, shape index: {}]   ;;  %s1148_s6 = inlined_call_operand.vmem [shape: f32[2,1], index: 6, kind: output, shape index: {}]  }
   0x1   :  { %897 = vmatprep.subr.bf16.mxu0 %v970_v0  ;;  %v27_v1 = vld [vmem:[%s1142_s2] sm:$0xff]  ;;  %v28_v2 = vld [vmem:[%s1142_s2 + $0x8] sm:$0x3]  ;;  %vm1024_vm2 = vmpackc.low %vm98_vm0, %vm971_vm1  ;;  %901 = vmatprep.subr.bf16.mxu1 %v970_v0  ;;  %v973_v5 = vmov 0.0   ;;  %v974_v6 = vmov 0   ;;  %v975_v8 = vmov 1  }
   0x2   :  { %v1029_v4 = vpack.c.bf16 %v28_v2, %v27_v1  ;;  %838 = vmatprep.mubr.msk.f32.mxu0 %vm972_vm3, %v973_v5  ;;  %945 = vset.pattern.permute.xlu0 %v974_v6  ;;  %v1036_v7 = vld [vmem:[%s1143_s0] sm:$0x3]  ;;  %vm94_vm4 = vcmask 80896   ;;  %v976_v18 = vmov 2   ;;  %v977_v26 = vmov 3  }
   0x3   :  { %35 = vperm.xlu0 %945, %v1036_v7   ;;  %845 = vmatprep.mubr.msk.f32.mxu1 %vm972_vm3, %v973_v5  ;;  %v1060_v9 = vld [vmem:[%s1144_s1] ss:$0 sm:$0xff]  ;;  %v978_v34 = vmov 4   ;;  %v979_v42 = vmov 5   ;;  %v980_v50 = vmov 6   ;;  %v981_v58 = vmov 7  }
   0x4   :  { %900 = vmatpush3.bf16.msk.msra.mxu0 %vm1024_vm2, %v1029_v4  ;;  %904 = vmatpush3.bf16.msk.msra.mxu1 %vm1024_vm2, %v1029_v4  ;;  %v1066_v12 = vld [vmem:[%s1145_s3] ss:$0 sm:$0xff]  ;;  %v11_v6 = vstv %s1147_s5  ;;  %vm781_vm5 = vcmask 1024  }
   0x5   :  { %905 = vmatprep.subr.bf16.mxu0 %v970_v0  ;;  %909 = vmatprep.subr.bf16.mxu1 %v970_v0  ;;  %v30_v2 = vld [vmem:[%s1146_s4] sm:$0xff]  ;;  %12 = vst [vmem:[#allocation2] sm:$0x1] %v11_v6 }
   0x6   :  { %947 = vset.pattern.permute.xlu1 %v976_v18 }
   0x7   :  { %839 = vmatmul.mubr.f32.vlgmr.msra.gmra.mrb[0].mxu0 %v973_v5  ;;  %946 = vset.pattern.permute.xlu0 %v975_v8 }
   0x8   :  { %908 = vmatpush3.bf16.msk.msra.mxu0 %vm1024_vm2, %v1029_v4  ;;  %852 = vmatprep.mubr.msk.f32.mxu0 %vm972_vm3, %v973_v5 }
   0x9   :  { %913 = vmatprep.subr.bf16.mxu0 %v970_v0  ;;  %53 = vperm.xlu0 %946, %v1036_v7  }
   0xa   :  { %59 = vperm.xlu1 %947, %v1036_v7  }
   0xd   :  { %950 = vset.pattern.permute.xlu0 %v979_v42 }
   0xe   :  { %948 = vset.pattern.permute.xlu1 %v977_v26  ;;  %77 = vperm.xlu0 %950, %v1036_v7  }
   0xf   :  { %65 = vperm.xlu1 %948, %v1036_v7  }
  0x12   :  { %953 = vset.pattern.permute.xlu0 %v981_v58 }
  0x13   :  { %949 = vset.pattern.permute.xlu1 %v978_v34 }
  0x14   :  { %71 = vperm.xlu1 %949, %v1036_v7  }
  0x18   :  { %951 = vset.pattern.permute.xlu1 %v980_v50 }
  0x19   :  { %83 = vperm.xlu1 %951, %v1036_v7  }
  0x1d   :  { %952 = vset.pattern.permute.xlu1 %v981_v58 }
  0x1e   :  { %89 = vperm.xlu1 %952, %v1036_v7  }
  0x82   :  { %v36_v10 = vpop.permute.xlu0 %35 }
  0x83   :  { %v44_v11 = vmul.f32 %v1060_v9, %v36_v10 }
  0x85   :  { %v51_v13 = vadd.f32 %v1066_v12, %v44_v11 }
  0x88   :  { %v54_v19 = vpop.permute.xlu0 %53 }
  0x89   :  { %v56_v20 = vmul.f32 %v1060_v9, %v54_v19  ;;  %v60_v27 = vpop.permute.xlu1 %59 }
  0x8a   :  { %v62_v28 = vmul.f32 %v1060_v9, %v60_v27 }
  0x8b   :  { %v57_v21 = vadd.f32 %v1066_v12, %v56_v20 }
  0x8c   :  { %v63_v29 = vadd.f32 %v1066_v12, %v62_v28 }
  0x8d   :  { %v78_v51 = vpop.permute.xlu0 %77 }
  0x8e   :  { %v66_v35 = vpop.permute.xlu1 %65  ;;  %v80_v52 = vmul.f32 %v1060_v9, %v78_v51 }
  0x8f   :  { %v68_v36 = vmul.f32 %v1060_v9, %v66_v35 }
  0x90   :  { %v81_v53 = vadd.f32 %v1066_v12, %v80_v52 }
  0x91   :  { %v69_v37 = vadd.f32 %v1066_v12, %v68_v36 }
  0x93   :  { %v72_v43 = vpop.permute.xlu1 %71 }
  0x94   :  { %v74_v44 = vmul.f32 %v1060_v9, %v72_v43 }
  0x96   :  { %v75_v45 = vadd.f32 %v1066_v12, %v74_v44 }
  0x98   :  { %v84_v59 = vpop.permute.xlu1 %83 }
  0x99   :  { %v86_v60 = vmul.f32 %v1060_v9, %v84_v59 }
  0x9b   :  { %v87_v61 = vadd.f32 %v1066_v12, %v86_v60 }
  0x9d   :  { %v90_v7 = vpop.permute.xlu1 %89 }
  0x9e   :  { %v92_v8 = vmul.f32 %v1060_v9, %v90_v7 }
  0xa0   :  { %v93_v10 = vadd.f32 %v1066_v12, %v92_v8 }
  0xda   :  { %v168_v14 = vpop.f32.mrb[0].mxu0 }
  0xdb   :  { %v172_v15 = vadd.f32 %v168_v14, %v51_v13  ;;  %v840_v16 = vpop.f32.mrb[1].mxu0 }
  0xdc   :  { %v804_v16 = vld [vmem:[#allocation2] ss:$0 sm:$0xff] }
  0xdd   :  { %954 = vtanh.f32 %v172_v15 }
  0xe7   :  { %v955_v17 = vpop.eup %954 }
  0xe8   :  { %846 = vmatmul.mubr.msk.f32.vlgmr.msra.gmra.mrb[0].mxu1 %vm94_vm4, %v955_v17 }
  0xe9   :  { %912 = vmatpush3.bf16.msk.msra.mxu1 %vm1024_vm2, %v1029_v4  ;;  %859 = vmatprep.mubr.msk.f32.mxu1 %vm972_vm3, %v973_v5 }
  0xea   :  { %917 = vmatprep.subr.bf16.mxu1 %v970_v0 }
 0x1bb   :  { %v243_v22 = vpop.f32.mrb[0].mxu1 }
 0x1bc   :  { %v247_v23 = vadd.f32 %v243_v22, %v57_v21  ;;  %v847_v24 = vpop.f32.mrb[1].mxu1 }
 0x1be   :  { %956 = vtanh.f32 %v247_v23 }
 0x1c8   :  { %v957_v25 = vpop.eup %956 }
 0x1c9   :  { %853 = vmatmul.mubr.msk.f32.vlgmr.msra.gmra.mrb[2].mxu0 %vm94_vm4, %v957_v25 }
 0x1ca   :  { %916 = vmatpush3.bf16.msk.msra.mxu0 %vm1024_vm2, %v1029_v4  ;;  %866 = vmatprep.mubr.msk.f32.mxu0 %vm972_vm3, %v973_v5 }
 0x1cb   :  { %921 = vmatprep.subr.bf16.mxu0 %v970_v0 }
 0x29c   :  { %v318_v30 = vpop.f32.mrb[2].mxu0 }
 0x29d   :  { %v322_v31 = vadd.f32 %v318_v30, %v63_v29  ;;  %v854_v32 = vpop.f32.mrb[3].mxu0 }
 0x29f   :  { %958 = vtanh.f32 %v322_v31 }
 0x2a9   :  { %v959_v33 = vpop.eup %958 }
 0x2aa   :  { %860 = vmatmul.mubr.msk.f32.vlgmr.msra.gmra.mrb[2].mxu1 %vm94_vm4, %v959_v33 }
 0x2ab   :  { %920 = vmatpush3.bf16.msk.msra.mxu1 %vm1024_vm2, %v1029_v4  ;;  %873 = vmatprep.mubr.msk.f32.mxu1 %vm972_vm3, %v973_v5 }
 0x2ac   :  { %925 = vmatprep.subr.bf16.mxu1 %v970_v0 }
 0x37d   :  { %v393_v38 = vpop.f32.mrb[2].mxu1 }
 0x37e   :  { %v397_v39 = vadd.f32 %v393_v38, %v69_v37  ;;  %v861_v40 = vpop.f32.mrb[3].mxu1 }
 0x380   :  { %960 = vtanh.f32 %v397_v39 }
 0x38a   :  { %v961_v41 = vpop.eup %960 }
 0x38b   :  { %867 = vmatmul.mubr.msk.f32.vlgmr.msra.gmra.mrb[4].mxu0 %vm94_vm4, %v961_v41 }
 0x38c   :  { %924 = vmatpush3.bf16.msk.msra.mxu0 %vm1024_vm2, %v1029_v4  ;;  %880 = vmatprep.mubr.msk.f32.mxu0 %vm972_vm3, %v973_v5 }
 0x38d   :  { %929 = vmatprep.subr.bf16.mxu0 %v970_v0 }
 0x45e   :  { %v468_v46 = vpop.f32.mrb[4].mxu0 }
 0x45f   :  { %v472_v47 = vadd.f32 %v468_v46, %v75_v45  ;;  %v868_v48 = vpop.f32.mrb[5].mxu0 }
 0x461   :  { %962 = vtanh.f32 %v472_v47 }
 0x46b   :  { %v963_v49 = vpop.eup %962 }
 0x46c   :  { %874 = vmatmul.mubr.msk.f32.vlgmr.msra.gmra.mrb[4].mxu1 %vm94_vm4, %v963_v49 }
 0x46d   :  { %928 = vmatpush3.bf16.msk.msra.mxu1 %vm1024_vm2, %v1029_v4  ;;  %887 = vmatprep.mubr.msk.f32.mxu1 %vm972_vm3, %v973_v5  ;;  %v31_v4 = vld [vmem:[%s1146_s4 + $0x8] sm:$0x3] }
 0x53f   :  { %v543_v54 = vpop.f32.mrb[4].mxu1 }
 0x540   :  { %v547_v55 = vadd.f32 %v543_v54, %v81_v53  ;;  %v875_v56 = vpop.f32.mrb[5].mxu1 }
 0x542   :  { %964 = vtanh.f32 %v547_v55 }
 0x54c   :  { %v965_v57 = vpop.eup %964 }
 0x54d   :  { %881 = vmatmul.mubr.msk.f32.vlgmr.msra.gmra.mrb[6].mxu0 %vm94_vm4, %v965_v57 }
 0x54e   :  { %894 = vmatprep.mubr.msk.f32.mxu0 %vm972_vm3, %v973_v5  ;;  %v930_v5 = vpack.c.bf16 %v31_v4, %v30_v2 }
 0x550   :  { %932 = vmatpush3.bf16.msk.msra.mxu0 %vm1024_vm2, %v930_v5 }
 0x620   :  { %v618_v62 = vpop.f32.mrb[6].mxu0 }
 0x621   :  { %v622_v63 = vadd.f32 %v618_v62, %v87_v61  ;;  %v882_v0 = vpop.f32.mrb[7].mxu0 }
 0x623   :  { %966 = vtanh.f32 %v622_v63 }
 0x62d   :  { %v967_v1 = vpop.eup %966 }
 0x62e   :  { %888 = vmatmul.mubr.msk.f32.vlgmr.msra.gmra.mrb[6].mxu1 %vm94_vm4, %v967_v1 }
 0x701   :  { %v693_v11 = vpop.f32.mrb[6].mxu1 }
 0x702   :  { %v697_v13 = vadd.f32 %v693_v11, %v93_v10  ;;  %v889_v14 = vpop.f32.mrb[7].mxu1 }
 0x704   :  { %968 = vtanh.f32 %v697_v13 }
 0x70e   :  { %v969_v15 = vpop.eup %968 }
 0x70f   :  { %895 = vmatmul.mubr.msk.f32.vlgmr.msra.gmra.mrb[8].mxu0 %vm94_vm4, %v969_v15 }
 0x7e2   :  { %v777_v3 = vpop.f32.mrb[8].mxu0 }
 0x7e3   :  { %v778_v17 = vadd.f32 %v804_v16, %v777_v3  ;;  %v896_v18 = vpop.f32.mrb[9].mxu0 }
 0x7e5   :  { %782 = vst.msk [vmem:[%s1148_s6] sm:$0x3] %vm781_vm5, %v778_v17 }

</bundles_post_ra>
